<compile_context>
chip_gen: v7x
topology: tpu7x:2x2x1
jax: 0.10.0
libtpu: 0.0.40
codegen_flags: <defaults>
</compile_context>

<pallas_src>
import functools

import jax
import jax.numpy as jnp
from jax import lax
from jax.experimental import pallas as pl
from jax.experimental.pallas import tpu as pltpu

_SMOOTH = 1e-5


def _dice_kernel(score_ref, target_ref, inter_ref, z_ref, y_ref,
                 *, hw, tile_hw, n_inner, apply_softmax, needs_mask):
    """score_ref: (1, C, T); target_ref: (1, 1, T) int32.
    inter/z/y refs: (1, 1, C, 1) f32 per-(batch, hw-chunk) partial sums."""
    o = pl.program_id(1)
    k = pl.program_id(2)

    @pl.when(k == 0)
    def _():
        inter_ref[...] = jnp.zeros_like(inter_ref)
        z_ref[...] = jnp.zeros_like(z_ref)
        y_ref[...] = jnp.zeros_like(y_ref)

    s = score_ref[0].astype(jnp.float32)          # (C, T) upcast in-kernel (bf16 ok)
    t = target_ref[0]                             # (1, T) int32
    C, T = s.shape

    if needs_mask:
        start = (o * n_inner + k) * tile_hw
        lane = lax.broadcasted_iota(jnp.int32, (1, T), 1) + start
        valid = lane < hw                         # (1, T) bool
    else:
        valid = None

    if apply_softmax:
        # Fused softmax over the class axis (all classes live in this block).
        if needs_mask:
            s = jnp.where(valid, s, 0.0)          # keep OOB lanes finite pre-exp
        s = s - jnp.max(s, axis=0, keepdims=True)
        e = jnp.exp(s)
        denom = jnp.sum(e, axis=0, keepdims=True)
        s = e * pl.reciprocal(denom, approx=True)  # EUP slot, not a VALU divide

    if needs_mask:
        s = jnp.where(valid, s, 0.0)              # OOB contributes nothing (also z_sum)

    cls = lax.broadcasted_iota(jnp.int32, (C, T), 0)
    mask = jnp.broadcast_to(t, (C, T)) == cls     # bool one-hot (no f32 materialization)
    if needs_mask:
        mask = jnp.logical_and(mask, jnp.broadcast_to(valid, (C, T)))

    inter = jnp.sum(jnp.where(mask, s, 0.0), axis=1, keepdims=True)   # (C, 1)
    z = jnp.sum(s * s, axis=1, keepdims=True)                         # (C, 1)
    y = jnp.sum(mask.astype(jnp.float32), axis=1, keepdims=True)      # (C, 1)

    inter_ref[...] += inter[None, None]
    z_ref[...] += z[None, None]
    y_ref[...] += y[None, None]


def _vmem_capacity_bytes():
    try:
        info = pltpu.get_tpu_info()
        return int(getattr(info, "vmem_capacity_bytes", 64 * 1024 * 1024))
    except Exception:
        return 64 * 1024 * 1024                   # conservative (v7x-safe) fallback


def _pick_tile(hw, c, in_itemsize):
    """Largest multiple-of-128 tile such that the double-buffered inputs PLUS
    the kernel's live f32 temporaries fit in ~40% of this chip's VMEM."""
    vmem_cap = _vmem_capacity_bytes()
    budget = int(vmem_cap * 0.40)
    c_pad = ((c + 7) // 8) * 8                    # sublane padding of class axis
    in_cols = 2 * (c_pad * in_itemsize + 8 * 4)   # 2 buffers: score col + padded int32 label col
    tmp_cols = 5 * c_pad * 4                      # ~5 live (C, T) f32 temporaries in the body
    per_col = in_cols + tmp_cols
    max_tile = max(128, (budget // per_col) // 128 * 128)
    hw_pad = pl.cdiv(hw, 128) * 128
    tile = int(min(hw_pad, max_tile))
    vmem_limit = int(vmem_cap * 0.75)
    return tile, vmem_limit


def _dice_partials(score, target, *, apply_softmax, tile_override=None):
    """score: (B, C, HW); target: (B, 1, HW) int32 ->
    three (B, n_outer, C, 1) f32 partial sums (intersect, z_sum, y_sum)."""
    B, C, HW = score.shape
    tile_hw, vmem_limit = _pick_tile(HW, C, jnp.dtype(score.dtype).itemsize)
    if tile_override is not None:
        tile_hw = int(tile_override)
    nt = pl.cdiv(HW, tile_hw)                     # real tiles along HW

    # Extra parallel HW-chunk axis so a single (or odd) batch still feeds both
    # TensorCores on megacore parts (v7x). Only pad the tile count when B == 1
    # (where the 2x core win outweighs one wasted, fully-masked tile).
    if nt >= 2 and (B == 1 or nt % 2 == 0):
        n_outer = 2
    else:
        n_outer = 1
    n_inner = pl.cdiv(nt, n_outer)
    needs_mask = (n_outer * n_inner * tile_hw != HW)
    needs_clamp = (n_outer * n_inner != nt)
    last = nt - 1

    def col_index(o, k):
        g = o * n_inner + k
        if needs_clamp:
            g = jnp.minimum(g, last)              # padded tiles re-read the last block (masked off)
        return g

    kernel = functools.partial(
        _dice_kernel, hw=HW, tile_hw=tile_hw, n_inner=n_inner,
        apply_softmax=apply_softmax, needs_mask=needs_mask)

    out_sds = jax.ShapeDtypeStruct((B, n_outer, C, 1), jnp.float32)
    out_spec = pl.BlockSpec((1, 1, C, 1), lambda b, o, k: (b, o, 0, 0))

    return pl.pallas_call(
        kernel,
        out_shape=(out_sds, out_sds, out_sds),
        grid_spec=pltpu.PrefetchScalarGridSpec(
            num_scalar_prefetch=0,
            grid=(B, n_outer, n_inner),
            in_specs=[
                pl.BlockSpec((1, C, tile_hw), lambda b, o, k: (b, 0, col_index(o, k))),
                pl.BlockSpec((1, 1, tile_hw), lambda b, o, k: (b, 0, col_index(o, k))),
            ],
            out_specs=[out_spec, out_spec, out_spec],
        ),
        compiler_params=pltpu.CompilerParams(
            dimension_semantics=("parallel", "parallel", "arbitrary"),
            vmem_limit_bytes=vmem_limit,
        ),
    )(score, target)


@functools.partial(jax.jit, static_argnames=("n_classes", "softmax", "tile_hw"))
def dice_loss(inputs, target, n_classes, weight=None, softmax=False, tile_hw=None):
    """JAX/Pallas equivalent of DiceLoss.forward.

    inputs: (B, C, H, W) probabilities (or logits if softmax=True); f32 or bf16.
    target: (B, H, W)   integer class labels in [0, n_classes).
    """
    B, C, H, W = inputs.shape
    assert C == n_classes
    HW = H * W

    score = inputs.reshape(B, C, HW)                     # free, contiguous reshape
    tgt = target.reshape(B, 1, HW).astype(jnp.int32)

    p_i, p_z, p_y = _dice_partials(score, tgt, apply_softmax=softmax,
                                   tile_override=tile_hw)

    intersect = jnp.sum(p_i, axis=(0, 1, 3))             # (C,)
    z_sum = jnp.sum(p_z, axis=(0, 1, 3))
    y_sum = jnp.sum(p_y, axis=(0, 1, 3))

    smooth = jnp.float32(_SMOOTH)
    dice = 1.0 - (2.0 * intersect + smooth) / (z_sum + y_sum + smooth)

    if weight is None:
        weight = jnp.ones((n_classes,), jnp.float32)
    else:
        weight = jnp.asarray(weight, jnp.float32)
    return jnp.sum(dice * weight) / n_classes


def _reference_dice_loss(inputs, target, n_classes, weight=None, softmax=False):
    """Pure-jnp reference mirroring the PyTorch module, for verification."""
    if softmax:
        inputs = jax.nn.softmax(inputs.astype(jnp.float32), axis=1)
    onehot = jnp.stack(
        [(target == i).astype(jnp.float32) for i in range(n_classes)], axis=1
    )
    if weight is None:
        weight = [1.0] * n_classes
    loss = 0.0
    for i in range(n_classes):
        s = inputs[:, i].astype(jnp.float32)
        t = onehot[:, i]
        inter = jnp.sum(s * t)
        y = jnp.sum(t * t)
        z = jnp.sum(s * s)
        d = 1.0 - (2.0 * inter + _SMOOTH) / (z + y + _SMOOTH)
        loss = loss + d * weight[i]
    return loss / n_classes


if __name__ == "__main__":
    key = jax.random.PRNGKey(0)

    # --- Main path: B=2, C=4, 16x16 (single tile, no mask, batch-parallel) ---
    B, C, H, W = 2, 4, 16, 16
    k1, k2 = jax.random.split(key)
    logits = jax.random.normal(k1, (B, C, H, W), dtype=jnp.float32)
    probs = jax.nn.softmax(logits, axis=1)
    target = jax.random.randint(k2, (B, H, W), 0, C, dtype=jnp.int32)

    loss = jax.block_until_ready(dice_loss(probs, target, n_classes=C))
    ref = _reference_dice_loss(probs, target, n_classes=C)
    assert jnp.allclose(loss, ref, rtol=1e-5, atol=1e-5), (loss, ref)

    # Fused in-kernel softmax (approx reciprocal -> slightly looser tolerance).
    loss_sm = jax.block_until_ready(dice_loss(logits, target, n_classes=C, softmax=True))
    ref_sm = _reference_dice_loss(logits, target, n_classes=C, softmax=True)
    assert jnp.allclose(loss_sm, ref_sm, rtol=3e-3, atol=1e-4), (loss_sm, ref_sm)

    # --- Tail-mask + HW-chunk-parallel path: B=1, 20x20, forced 128-lane tile ---
    k3, k4 = jax.random.split(k2)
    B2, H2, W2 = 1, 20, 20
    logits2 = jax.random.normal(k3, (B2, C, H2, W2), dtype=jnp.float32)
    probs2 = jax.nn.softmax(logits2, axis=1)
    target2 = jax.random.randint(k4, (B2, H2, W2), 0, C, dtype=jnp.int32)

    loss2 = jax.block_until_ready(dice_loss(probs2, target2, n_classes=C, tile_hw=128))
    ref2 = _reference_dice_loss(probs2, target2, n_classes=C)
    assert jnp.allclose(loss2, ref2, rtol=1e-5, atol=1e-5), (loss2, ref2)

    loss2_sm = jax.block_until_ready(
        dice_loss(logits2, target2, n_classes=C, softmax=True, tile_hw=128))
    ref2_sm = _reference_dice_loss(logits2, target2, n_classes=C, softmax=True)
    assert jnp.allclose(loss2_sm, ref2_sm, rtol=3e-3, atol=1e-4), (loss2_sm, ref2_sm)

    # --- Odd tile count with B=1: exercises padded-tile clamping (16x24 = 3 tiles) ---
    k5, k6 = jax.random.split(k4)
    B3, H3, W3 = 1, 16, 24
    probs3 = jax.nn.softmax(jax.random.normal(k5, (B3, C, H3, W3), jnp.float32), axis=1)
    target3 = jax.random.randint(k6, (B3, H3, W3), 0, C, dtype=jnp.int32)
    loss3 = jax.block_until_ready(dice_loss(probs3, target3, n_classes=C, tile_hw=128))
    ref3 = _reference_dice_loss(probs3, target3, n_classes=C)
    assert jnp.allclose(loss3, ref3, rtol=1e-5, atol=1e-5), (loss3, ref3)

    print("KERNEL_OK")
</pallas_src>

<mosaic_0001>
module attributes {stable_mosaic.version = 11 : i64} {
  func.func @_dice_kernel(%arg0: i32, %arg1: i32, %arg2: i32, %arg3: memref<1x4x256xf32, #tpu.memory_space<vmem>>, %arg4: memref<1x1x256xi32, #tpu.memory_space<vmem>>, %arg5: memref<1x1x4x1xf32, #tpu.memory_space<vmem>>, %arg6: memref<1x1x4x1xf32, #tpu.memory_space<vmem>>, %arg7: memref<1x1x4x1xf32, #tpu.memory_space<vmem>>) attributes {dimension_semantics = [#tpu.dimension_semantics<parallel>, #tpu.dimension_semantics<parallel>, #tpu.dimension_semantics<arbitrary>], iteration_bounds = array<i64: 2, 1, 1>, scalar_prefetch = 0 : i64, scratch_operands = 0 : i64, tpu.core_type = #tpu.core_type<tc>, window_params = [{transform_indices = @transform_0, window_bounds = array<i64: 1, 4, 256>}, {transform_indices = @transform_1, window_bounds = array<i64: 1, 1, 256>}, {transform_indices = @transform_2, window_bounds = array<i64: 1, 1, 4, 1>}, {transform_indices = @transform_3, window_bounds = array<i64: 1, 1, 4, 1>}, {transform_indices = @transform_4, window_bounds = array<i64: 1, 1, 4, 1>}]} {
    %c0_i32 = arith.constant 0 : i32
    %0 = arith.cmpi eq, %arg2, %c0_i32 : i32
    %1 = arith.extui %0 : i1 to i32
    %c0_i32_0 = arith.constant 0 : i32
    %2 = arith.cmpi ne, %1, %c0_i32_0 : i32
    scf.if %2 {
      %cst_33 = arith.constant 0.000000e+00 : f32
      %34 = vector.broadcast %cst_33 : f32 to vector<1x1x4x1xf32>
      %c0_34 = arith.constant 0 : index
      %c0_35 = arith.constant 0 : index
      %c0_36 = arith.constant 0 : index
      %c0_37 = arith.constant 0 : index
      %35 = vector.load %arg5[%c0_34, %c0_35, %c0_36, %c0_37] : memref<1x1x4x1xf32, #tpu.memory_space<vmem>>, vector<1x1x4x1xf32>
      tpu.vector_store %arg5[%c0_34, %c0_35, %c0_36, %c0_37], %34 {strides = array<i32>} : memref<1x1x4x1xf32, #tpu.memory_space<vmem>>, vector<1x1x4x1xf32>,
      %cst_38 = arith.constant 0.000000e+00 : f32
      %36 = vector.broadcast %cst_38 : f32 to vector<1x1x4x1xf32>
      %c0_39 = arith.constant 0 : index
      %c0_40 = arith.constant 0 : index
      %c0_41 = arith.constant 0 : index
      %c0_42 = arith.constant 0 : index
      %37 = vector.load %arg6[%c0_39, %c0_40, %c0_41, %c0_42] : memref<1x1x4x1xf32, #tpu.memory_space<vmem>>, vector<1x1x4x1xf32>
      tpu.vector_store %arg6[%c0_39, %c0_40, %c0_41, %c0_42], %36 {strides = array<i32>} : memref<1x1x4x1xf32, #tpu.memory_space<vmem>>, vector<1x1x4x1xf32>,
      %cst_43 = arith.constant 0.000000e+00 : f32
      %38 = vector.broadcast %cst_43 : f32 to vector<1x1x4x1xf32>
      %c0_44 = arith.constant 0 : index
      %c0_45 = arith.constant 0 : index
      %c0_46 = arith.constant 0 : index
      %c0_47 = arith.constant 0 : index
      %39 = vector.load %arg7[%c0_44, %c0_45, %c0_46, %c0_47] : memref<1x1x4x1xf32, #tpu.memory_space<vmem>>, vector<1x1x4x1xf32>
      tpu.vector_store %arg7[%c0_44, %c0_45, %c0_46, %c0_47], %38 {strides = array<i32>} : memref<1x1x4x1xf32, #tpu.memory_space<vmem>>, vector<1x1x4x1xf32>,
    } else {
    }
    %c0 = arith.constant 0 : index
    %c0_1 = arith.constant 0 : index
    %c0_2 = arith.constant 0 : index
    %3 = vector.load %arg3[%c0, %c0_1, %c0_2] : memref<1x4x256xf32, #tpu.memory_space<vmem>>, vector<1x4x256xf32>
    %4 = vector.shape_cast %3 : vector<1x4x256xf32> to vector<4x256xf32>
    %c0_3 = arith.constant 0 : index
    %c0_4 = arith.constant 0 : index
    %c0_5 = arith.constant 0 : index
    %5 = vector.load %arg4[%c0_3, %c0_4, %c0_5] : memref<1x1x256xi32, #tpu.memory_space<vmem>>, vector<1x1x256xi32>
    %6 = vector.shape_cast %5 : vector<1x1x256xi32> to vector<1x256xi32>
    %7 = tpu.iota {dimensions = array<i32: 0>} : vector<4x256xi32>
    %8 = vector.shape_cast %6 : vector<1x256xi32> to vector<1x256xi32>
    %9 = vector.broadcast %8 : vector<1x256xi32> to vector<4x256xi32>
    %10 = arith.cmpi eq, %9, %7 : vector<4x256xi32>
    %cst = arith.constant 0.000000e+00 : f32
    %11 = vector.broadcast %cst : f32 to vector<4x256xf32>
    %12 = arith.select %10, %4, %11 : vector<4x256xi1>, vector<4x256xf32>
    %cst_6 = arith.constant dense<0.000000e+00> : vector<4xf32>
    %13 = vector.multi_reduction <add>, %12, %cst_6 [1] : vector<4x256xf32> to vector<4xf32>
    %14 = vector.shape_cast %13 : vector<4xf32> to vector<4x1xf32>
    %15 = arith.mulf %4, %4 : vector<4x256xf32>
    %cst_7 = arith.constant dense<0.000000e+00> : vector<4xf32>
    %16 = vector.multi_reduction <add>, %15, %cst_7 [1] : vector<4x256xf32> to vector<4xf32>
    %17 = vector.shape_cast %16 : vector<4xf32> to vector<4x1xf32>
    %18 = arith.extui %10 : vector<4x256xi1> to vector<4x256xi32>
    %19 = arith.sitofp %18 : vector<4x256xi32> to vector<4x256xf32>
    %cst_8 = arith.constant dense<0.000000e+00> : vector<4xf32>
    %20 = vector.multi_reduction <add>, %19, %cst_8 [1] : vector<4x256xf32> to vector<4xf32>
    %21 = vector.shape_cast %20 : vector<4xf32> to vector<4x1xf32>
    %c0_9 = arith.constant 0 : index
    %c0_10 = arith.constant 0 : index
    %c0_11 = arith.constant 0 : index
    %c0_12 = arith.constant 0 : index
    %22 = vector.load %arg5[%c0_9, %c0_10, %c0_11, %c0_12] : memref<1x1x4x1xf32, #tpu.memory_space<vmem>>, vector<1x1x4x1xf32>
    %23 = vector.shape_cast %14 : vector<4x1xf32> to vector<1x1x4x1xf32>
    %24 = arith.addf %22, %23 : vector<1x1x4x1xf32>
    %c0_13 = arith.constant 0 : index
    %c0_14 = arith.constant 0 : index
    %c0_15 = arith.constant 0 : index
    %c0_16 = arith.constant 0 : index
    %25 = vector.load %arg5[%c0_13, %c0_14, %c0_15, %c0_16] : memref<1x1x4x1xf32, #tpu.memory_space<vmem>>, vector<1x1x4x1xf32>
    tpu.vector_store %arg5[%c0_13, %c0_14, %c0_15, %c0_16], %24 {strides = array<i32>} : memref<1x1x4x1xf32, #tpu.memory_space<vmem>>, vector<1x1x4x1xf32>,
    %c0_17 = arith.constant 0 : index
    %c0_18 = arith.constant 0 : index
    %c0_19 = arith.constant 0 : index
    %c0_20 = arith.constant 0 : index
    %26 = vector.load %arg6[%c0_17, %c0_18, %c0_19, %c0_20] : memref<1x1x4x1xf32, #tpu.memory_space<vmem>>, vector<1x1x4x1xf32>
    %27 = vector.shape_cast %17 : vector<4x1xf32> to vector<1x1x4x1xf32>
    %28 = arith.addf %26, %27 : vector<1x1x4x1xf32>
    %c0_21 = arith.constant 0 : index
    %c0_22 = arith.constant 0 : index
    %c0_23 = arith.constant 0 : index
    %c0_24 = arith.constant 0 : index
    %29 = vector.load %arg6[%c0_21, %c0_22, %c0_23, %c0_24] : memref<1x1x4x1xf32, #tpu.memory_space<vmem>>, vector<1x1x4x1xf32>
    tpu.vector_store %arg6[%c0_21, %c0_22, %c0_23, %c0_24], %28 {strides = array<i32>} : memref<1x1x4x1xf32, #tpu.memory_space<vmem>>, vector<1x1x4x1xf32>,
    %c0_25 = arith.constant 0 : index
    %c0_26 = arith.constant 0 : index
    %c0_27 = arith.constant 0 : index
    %c0_28 = arith.constant 0 : index
    %30 = vector.load %arg7[%c0_25, %c0_26, %c0_27, %c0_28] : memref<1x1x4x1xf32, #tpu.memory_space<vmem>>, vector<1x1x4x1xf32>
    %31 = vector.shape_cast %21 : vector<4x1xf32> to vector<1x1x4x1xf32>
    %32 = arith.addf %30, %31 : vector<1x1x4x1xf32>
    %c0_29 = arith.constant 0 : index
    %c0_30 = arith.constant 0 : index
    %c0_31 = arith.constant 0 : index
    %c0_32 = arith.constant 0 : index
    %33 = vector.load %arg7[%c0_29, %c0_30, %c0_31, %c0_32] : memref<1x1x4x1xf32, #tpu.memory_space<vmem>>, vector<1x1x4x1xf32>
    tpu.vector_store %arg7[%c0_29, %c0_30, %c0_31, %c0_32], %32 {strides = array<i32>} : memref<1x1x4x1xf32, #tpu.memory_space<vmem>>, vector<1x1x4x1xf32>,
    return
  }
  func.func @transform_0(%arg0: i32, %arg1: i32, %arg2: i32) -> (i32, i32, i32) {
    %c1_i32 = arith.constant 1 : i32
    %0 = arith.muli %arg1, %c1_i32 : i32
    %1 = arith.addi %0, %arg2 : i32
    %c0_i32 = arith.constant 0 : i32
    %c0_i32_0 = arith.constant 0 : i32
    return %arg0, %c0_i32, %1 : i32, i32, i32
  }
  func.func @transform_1(%arg0: i32, %arg1: i32, %arg2: i32) -> (i32, i32, i32) {
    %c1_i32 = arith.constant 1 : i32
    %0 = arith.muli %arg1, %c1_i32 : i32
    %1 = arith.addi %0, %arg2 : i32
    %c0_i32 = arith.constant 0 : i32
    %c0_i32_0 = arith.constant 0 : i32
    return %arg0, %c0_i32, %1 : i32, i32, i32
  }
  func.func @transform_2(%arg0: i32, %arg1: i32, %arg2: i32) -> (i32, i32, i32, i32) {
    %c0_i32 = arith.constant 0 : i32
    %c0_i32_0 = arith.constant 0 : i32
    %c0_i32_1 = arith.constant 0 : i32
    return %arg0, %arg1, %c0_i32, %c0_i32_0 : i32, i32, i32, i32
  }
  func.func @transform_3(%arg0: i32, %arg1: i32, %arg2: i32) -> (i32, i32, i32, i32) {
    %c0_i32 = arith.constant 0 : i32
    %c0_i32_0 = arith.constant 0 : i32
    %c0_i32_1 = arith.constant 0 : i32
    return %arg0, %arg1, %c0_i32, %c0_i32_0 : i32, i32, i32, i32
  }
  func.func @transform_4(%arg0: i32, %arg1: i32, %arg2: i32) -> (i32, i32, i32, i32) {
    %c0_i32 = arith.constant 0 : i32
    %c0_i32_0 = arith.constant 0 : i32
    %c0_i32_1 = arith.constant 0 : i32
    return %arg0, %arg1, %c0_i32, %c0_i32_0 : i32, i32, i32, i32
  }
}

</mosaic_0001>

<bundles_post_ra>
// kernel: dice_loss.1
= control target key start
LH: loop header
LB: loop body
LE: loop exit
PB: predicated region body
PF: predicated region fallthrough
CT: control target
= control target key end

     0   :  { %s653_s15 = smov 0   ;;  %s655_s16 = smov 0   ;;  %s717_s0 = inlined_call_operand.vmem [shape: f32[2,4,256], index: 0, kind: input, shape index: {}]   ;;  %s718_s1 = inlined_call_operand.vmem [shape: s32[2,1,256], index: 1, kind: input, shape index: {}]   ;;  %s719_s2 = inlined_call_operand.vmem [shape: f32[2,1,4,1], index: 2, kind: output, shape index: {0}]   ;;  %s720_s3 = inlined_call_operand.vmem [shape: f32[2,1,4,1], index: 3, kind: output, shape index: {1}]   ;;  %s721_s4 = inlined_call_operand.vmem [shape: f32[2,1,4,1], index: 4, kind: output, shape index: {2}]  }
   0x1   :  { %s657_s17 = smov 0  }
   0x2 LB: > { %s34_s18 = sadd.s32 1, %s621_s16  ;;  %p565_p0 = scmp.ge.s32.totalorder %s625_s17, 1  ;;  %s625_s17 = sphi %s657_s17, %s15_s17   ;;  %s621_s16 = sphi %s655_s16, %s723_s16   ;;  %s617_s15 = sphi %s653_s15, %s722_s15  }
   0x3   : > { %p36_p1 = scmp.ge.s32.totalorder %s34_s18, 2  ;;  %p223_p2 = scmp.lt.s32.totalorder %s625_s17, 3 }
   0x5   : > { %s725_s18 = smov (%p36_p1, %s34_s18), 0  ;;  %p224_p3 = pnand %p565_p0, %p223_p2 }
   0x6   : > { %p281_p4 = scmp.lt.s32.totalorder (!%p224_p3), %s617_s15, 1  ;;  %v333_v0 = vlaneseq (!%p224_p3)  ;;  %vm327_vm0 = vcmask (!%p224_p3), 3072   ;;  %vm350_vm1 = vcmask (!%p224_p3), 1043456   ;;  %v627_v10 = vmov (!%p224_p3), 0.0  }
   0x7   : > { %227 = sbr.rel (%p224_p3) target bundleno = 175 (0xaf), region = 28 }
   0x8   : > { %v334_v1 = vshrl.u32 (!%p224_p3), %v333_v0, 7 }
   0xa   : > { %v337_v2 = vsub.s32 (!%p224_p3), 0, %v334_v1  ;;  %v341_v3 = vsub.s32 (!%p224_p3), 1, %v334_v1 }
   0xe   : > { %s727_s15 = smov (!%p281_p4, %s617_s15), 1 }
   0xf   : > { %s576_s19 = sshll.u32 %s727_s15, 3  ;;  %s568_s20 = sshll.u32 %s727_s15, 1 }
  0x10   : > { %s288_s23 = scalar_lea.vmem %s717_s0, %s576_s19  ;;  %s299_s26 = scalar_lea.vmem %s718_s1, %s568_s20 }
  0x11   : > { %v331_v4 = vld [vmem:[%s288_s23] sm:$0xff]  ;;  %s677_s27 = sshll.u32 %s727_s15, 2 }
  0x12   : > { %v332_v5 = vld [vmem:[%s299_s26] sm:$0x3]  ;;  %v346_v8 = vcombine.high %v331_v4, %v331_v4  ;;  %v356_v9 = vmul.f32 %v331_v4, %v331_v4  ;;  %s683_s30 = scalar_lea.vmem %s719_s2, %s677_s27  ;;  %s322_s7 = scalar_lea.vmem %s721_s4, %s677_s27 }
  0x13   : > { %v338_v6 = vrot.slane %v332_v5, %v337_v2  ;;  %v342_v7 = vrot.slane %v332_v5, %v341_v3  ;;  %328 = vst.msk [vmem:[%s683_s30] sm:$0xf] %vm327_vm0, %v627_v10  ;;  %s315_s10 = scalar_lea.vmem %s720_s3, %s677_s27  ;;  %330 = vst.msk [vmem:[%s322_s7] sm:$0xf] %vm327_vm0, %v627_v10 }
  0x14   : > { %v358_v11 = vcombine.high %v356_v9, %v356_v9  ;;  %v360_v12 = vsel %vm350_vm1, %v356_v9, 0.0  ;;  %329 = vst.msk [vmem:[%s315_s10] sm:$0xf] %vm327_vm0, %v627_v10 }
  0x15   : > { %vm343_vm2 = vcmp.eq.s32.totalorder %v338_v6, %v334_v1  ;;  %vm344_vm3 = vcmp.eq.s32.totalorder %v342_v7, %v334_v1 }
  0x16   : > { %v348_v13 = vsel %vm343_vm2, %v331_v4, 0.0  ;;  %v349_v14 = vsel %vm344_vm3, %v346_v8, 0.0  ;;  %v572_v15 = vsel %vm343_vm2, 1.0, %v627_v10  ;;  %v573_v16 = vsel %vm344_vm3, 1.0, %v627_v10 }
  0x17   : > { %v351_v17 = vsel %vm350_vm1, %v348_v13, 0.0  ;;  %v352_v18 = vsel %vm350_vm1, %v349_v14, 0.0  ;;  %v369_v19 = vsel %vm350_vm1, %v572_v15, 0.0  ;;  %v370_v20 = vsel %vm350_vm1, %v573_v16, 0.0 }
  0x18   : > { %v353_v21 = vadd.f32 %v352_v18, %v351_v17  ;;  %v371_v22 = vadd.f32 %v370_v20, %v369_v19  ;;  %v361_v23 = vsel %vm350_vm1, %v358_v11, 0.0 }
  0x19   : > { %v362_v24 = vadd.f32 %v361_v23, %v360_v12 }
  0x1a   : > { %354 = vadd.xlane.f32.xlu0 %v353_v21  ;;  %372 = vadd.xlane.f32.xlu1 %v371_v22  ;;  %v374_v25 = vld [vmem:[%s683_s30] sm:$0xf] }
  0x1b   : > { %v381_v26 = vld [vmem:[%s322_s7] sm:$0xf] }
  0x1c   : > { %v378_v31 = vld [vmem:[%s315_s10] sm:$0xf] }
  0x1e   : > { %363 = vadd.xlane.f32.xlu0 %v362_v24 }
  0xa7   : > { %v355_v27 = vpop.xlane.xlu0 %354  ;;  %v373_v28 = vpop.xlane.xlu1 %372 }
  0xa8   : > { %v375_v29 = vadd.f32 %v374_v25, %v355_v27  ;;  %v382_v30 = vadd.f32 %v381_v26, %v373_v28 }
  0xaa   : > { %377 = vst.msk [vmem:[%s683_s30] sm:$0xf] %vm327_vm0, %v375_v29  ;;  %383 = vst.msk [vmem:[%s322_s7] sm:$0xf] %vm327_vm0, %v382_v30 }
  0xab   : > { %v364_v32 = vpop.xlane.xlu0 %363 }
  0xac   : > { %v379_v33 = vadd.f32 %v378_v31, %v364_v32 }
  0xae   : > { %380 = vst.msk [vmem:[%s315_s10] sm:$0xf] %vm327_vm0, %v379_v33 }
  0xaf PF: > { %s15_s17 = sadd.s32 1, %s625_s17   ;;  %s722_s15 = smov %s621_s16 }
  0xb0   : > { %p12_p5 = scmp.ge.s32.totalorder %s15_s17, 4   ;;  %s723_s16 = smov %s725_s18 }
  0xb2   :  { %14 = sbr.rel (!%p12_p5) target bundleno = 2 (0x2), region = 89 }

</bundles_post_ra>
